<compile_context>
chip_gen: v6e
topology: v6e:2x2x1
jax: 0.10.0
libtpu: 0.0.40
codegen_flags: <defaults>
</compile_context>

<pallas_src>
import functools

import jax
import jax.numpy as jnp
from jax import lax
from jax.experimental import pallas as pl
from jax.experimental.pallas import tpu as pltpu


def _skipns_kernel(wp_ref, cp_ref,            # scalar-prefetch (SMEM) index vectors
                   emb_hbm, ctx_hbm,          # full embedding tables in HBM (pl.ANY)
                   obj_ref,                   # (1, 1) f32 output, resident accumulator
                   emb_buf, ctx_buf,          # VMEM scratch: gathered rows
                   emb_sem, ctx_sem,          # DMA semaphores
                   *, Bw, Bc, TW, TC, negative_sample):
    i = pl.program_id(0)   # context-row tile index
    j = pl.program_id(1)   # word-row tile index (inner / fastest axis)

    @pl.when(jnp.logical_and(i == 0, j == 0))
    def _():
        obj_ref[...] = jnp.zeros_like(obj_ref)

    # Gather TC context rows only when the inner (word) loop restarts; the
    # scratch buffer persists across grid steps.
    @pl.when(j == 0)
    def _():
        copies = []
        for r in range(TC):
            idx = cp_ref[i * TC + r]
            c = pltpu.make_async_copy(ctx_hbm.at[pl.ds(idx, 1), :],
                                      ctx_buf.at[pl.ds(r, 1), :],
                                      ctx_sem.at[r])
            c.start()
            copies.append(c)
        for c in copies:
            c.wait()

    # Gather TW word rows for this tile (all DMAs in flight before waiting).
    copies = []
    for r in range(TW):
        idx = wp_ref[j * TW + r]
        c = pltpu.make_async_copy(emb_hbm.at[pl.ds(idx, 1), :],
                                  emb_buf.at[pl.ds(r, 1), :],
                                  emb_sem.at[r])
        c.start()
        copies.append(c)
    for c in copies:
        c.wait()

    ctx = ctx_buf[...]
    emb = emb_buf[...]
    if negative_sample:
        # Negate the (TC, E) operand instead of the (TC, TW) score.
        ctx = -ctx

    # score = emb_context @ emb.T without materializing a transpose.
    score = lax.dot_general(ctx, emb,
                            dimension_numbers=(((1,), (1,)), ((), ())),
                            preferred_element_type=jnp.float32)

    # Numerically stable logsigmoid(x) = min(x, 0) - log1p(exp(-|x|)).
    logsig = jnp.minimum(score, 0.0) - jnp.log1p(jnp.exp(-jnp.abs(score)))

    # Mask rows/cols that came from index padding.
    row = lax.broadcasted_iota(jnp.int32, (TC, TW), 0) + i * TC
    col = lax.broadcasted_iota(jnp.int32, (TC, TW), 1) + j * TW
    valid = jnp.logical_and(row < Bc, col < Bw)
    logsig = jnp.where(valid, logsig, 0.0)

    # obj = -sum(logsigmoid(score)); accumulate directly into the resident output.
    obj_ref[...] -= jnp.sum(logsig, keepdims=True)


def _round_up(x, m):
    return ((x + m - 1) // m) * m


@functools.partial(jax.jit, static_argnames=("negative_sample",))
def skip_ns_forward(emb_table, ctx_table, word_positive, context_position,
                    negative_sample=False):
    emb_table = emb_table.astype(jnp.float32)
    ctx_table = ctx_table.astype(jnp.float32)
    E = emb_table.shape[1]
    Bw = word_positive.shape[0]
    Bc = context_position.shape[0]

    # Tile sizes (rows per tile), capped so VMEM use stays tiny even on v7x.
    TW = min(128, _round_up(Bw, 8))
    TC = min(128, _round_up(Bc, 8))
    nw = pl.cdiv(Bw, TW)
    nc = pl.cdiv(Bc, TC)

    # Pad index vectors to whole tiles (padded entries point at row 0 and are
    # masked out inside the kernel).
    wp = jnp.pad(word_positive.astype(jnp.int32), (0, nw * TW - Bw))
    cp = jnp.pad(context_position.astype(jnp.int32), (0, nc * TC - Bc))

    kernel = functools.partial(_skipns_kernel, Bw=Bw, Bc=Bc, TW=TW, TC=TC,
                               negative_sample=bool(negative_sample))

    out = pl.pallas_call(
        kernel,
        out_shape=jax.ShapeDtypeStruct((1, 1), jnp.float32),
        grid_spec=pltpu.PrefetchScalarGridSpec(
            num_scalar_prefetch=2,
            grid=(nc, nw),
            in_specs=[
                pl.BlockSpec(memory_space=pl.ANY),   # emb table stays in HBM
                pl.BlockSpec(memory_space=pl.ANY),   # context table stays in HBM
            ],
            out_specs=pl.BlockSpec((1, 1), lambda i, j, *_: (0, 0)),
            scratch_shapes=[
                pltpu.VMEM((TW, E), jnp.float32),
                pltpu.VMEM((TC, E), jnp.float32),
                pltpu.SemaphoreType.DMA((TW,)),
                pltpu.SemaphoreType.DMA((TC,)),
            ],
        ),
        compiler_params=pltpu.CompilerParams(
            dimension_semantics=("arbitrary", "arbitrary"),
            vmem_limit_bytes=32 * 1024 * 1024,
        ),
        cost_estimate=pl.CostEstimate(
            flops=2 * Bc * Bw * E,
            transcendentals=2 * Bc * Bw,
            bytes_accessed=4 * (Bc * E + Bw * E + Bc + Bw + 1),
        ),
    )(wp, cp, emb_table, ctx_table)
    # TODO(synk): cross-grid-step double-buffering of the row-gather DMAs (and
    # bf16 EUP transcendentals on v6e/v7x) left out to keep the kernel portable.
    return out[0, 0]


def xavier_uniform(key, shape, dtype=jnp.float32):
    # torch.nn.init.xavier_uniform on a 2D weight (fan_out, fan_in) = shape
    fan_out, fan_in = shape
    bound = (6.0 / (fan_in + fan_out)) ** 0.5
    return jax.random.uniform(key, shape, dtype, minval=-bound, maxval=bound)


def reference_forward(emb_table, ctx_table, word_positive, context_position,
                      negative_sample=False):
    emb = emb_table[word_positive]
    ctx = ctx_table[context_position]
    score = ctx @ emb.T
    if negative_sample:
        score = -score
    logsig = jnp.minimum(score, 0.0) - jnp.log1p(jnp.exp(-jnp.abs(score)))
    return -jnp.sum(logsig)


if __name__ == "__main__":
    nwords, emb_size, seq = 100, 32, 8

    key = jax.random.PRNGKey(0)
    k_emb, k_ctx, k_wp, k_cp = jax.random.split(key, 4)

    # Deterministic synthetic parameters (matching nn.Embedding(nwords, emb_size)).
    emb_table = xavier_uniform(k_emb, (nwords, emb_size))
    ctx_table = xavier_uniform(k_ctx, (nwords, emb_size))

    word_positive = jax.random.randint(k_wp, (seq,), 0, nwords, dtype=jnp.int32)
    context_position = jax.random.randint(k_cp, (seq,), 0, nwords, dtype=jnp.int32)

    obj_pos = skip_ns_forward(emb_table, ctx_table, word_positive,
                              context_position, negative_sample=False)
    obj_neg = skip_ns_forward(emb_table, ctx_table, word_positive,
                              context_position, negative_sample=True)
    jax.block_until_ready((obj_pos, obj_neg))

    ref_pos = reference_forward(emb_table, ctx_table, word_positive,
                                context_position, negative_sample=False)
    ref_neg = reference_forward(emb_table, ctx_table, word_positive,
                                context_position, negative_sample=True)

    assert jnp.allclose(obj_pos, ref_pos, rtol=1e-5, atol=1e-5), (obj_pos, ref_pos)
    assert jnp.allclose(obj_neg, ref_neg, rtol=1e-5, atol=1e-5), (obj_neg, ref_neg)

    print("KERNEL_OK")
</pallas_src>

<mosaic_0001>
module attributes {stable_mosaic.version = 11 : i64} {
  func.func @_skipns_kernel(%arg0: i32, %arg1: i32, %arg2: memref<8xi32, #tpu.memory_space<smem>>, %arg3: memref<8xi32, #tpu.memory_space<smem>>, %arg4: memref<100x32xf32, #tpu.memory_space<any>>, %arg5: memref<100x32xf32, #tpu.memory_space<any>>, %arg6: memref<1x1xf32, #tpu.memory_space<vmem>>, %arg7: memref<8x32xf32, #tpu.memory_space<vmem>>, %arg8: memref<8x32xf32, #tpu.memory_space<vmem>>, %arg9: memref<8x!tpu.dma_semaphore, #tpu.memory_space<semaphore_mem>>, %arg10: memref<8x!tpu.dma_semaphore, #tpu.memory_space<semaphore_mem>>) attributes {dimension_semantics = [#tpu.dimension_semantics<arbitrary>, #tpu.dimension_semantics<arbitrary>], iteration_bounds = array<i64: 1, 1>, scalar_prefetch = 2 : i64, scratch_operands = 4 : i64, tpu.core_type = #tpu.core_type<tc>, window_params = [{}, {}, {pipeline_mode = #tpu.pipeline_mode<synchronous>, transform_indices = @transform_2, window_bounds = array<i64: 1, 1>}]} {
    %c0_i32 = arith.constant 0 : i32
    %0 = arith.cmpi eq, %arg0, %c0_i32 : i32
    %c0_i32_0 = arith.constant 0 : i32
    %1 = arith.cmpi eq, %arg1, %c0_i32_0 : i32
    %2 = arith.andi %0, %1 : i1
    %3 = arith.extui %2 : i1 to i32
    %c0_i32_1 = arith.constant 0 : i32
    %4 = arith.cmpi ne, %3, %c0_i32_1 : i32
    scf.if %4 {
      %cst_91 = arith.constant 0.000000e+00 : f32
      %138 = vector.broadcast %cst_91 : f32 to vector<1x1xf32>
      %c0_92 = arith.constant 0 : index
      %c0_93 = arith.constant 0 : index
      %139 = vector.load %arg6[%c0_92, %c0_93] : memref<1x1xf32, #tpu.memory_space<vmem>>, vector<1x1xf32>
      tpu.vector_store %arg6[%c0_92, %c0_93], %138 {strides = array<i32>} : memref<1x1xf32, #tpu.memory_space<vmem>>, vector<1x1xf32>,
    } else {
    }
    %c0_i32_2 = arith.constant 0 : i32
    %5 = arith.cmpi eq, %arg1, %c0_i32_2 : i32
    %6 = arith.extui %5 : i1 to i32
    %c0_i32_3 = arith.constant 0 : i32
    %7 = arith.cmpi ne, %6, %c0_i32_3 : i32
    scf.if %7 {
      %c8_i32_91 = arith.constant 8 : i32
      %138 = arith.muli %arg0, %c8_i32_91 : i32
      %c0_i32_92 = arith.constant 0 : i32
      %139 = arith.addi %138, %c0_i32_92 : i32
      %140 = arith.index_cast %139 : i32 to index
      %141 = memref.load %arg3[%140] : memref<8xi32, #tpu.memory_space<smem>>
      %c0_i32_93 = arith.constant 0 : i32
      %c0_i32_94 = arith.constant 0 : i32
      %142 = tpu.memref_slice %arg5[%141, %c0_i32_94] : memref<100x32xf32, #tpu.memory_space<any>> -> memref<1x32xf32, #tpu.memory_space<any>>
      %c0_i32_95 = arith.constant 0 : i32
      %c0_i32_96 = arith.constant 0 : i32
      %143 = tpu.memref_slice %arg8[%c0_i32_95, %c0_i32_96] : memref<8x32xf32, #tpu.memory_space<vmem>> -> memref<1x32xf32, #tpu.memory_space<vmem>>
      %144 = tpu.memref_slice %arg10[%c0_i32_93] : memref<8x!tpu.dma_semaphore, #tpu.memory_space<semaphore_mem>> -> memref<1x!tpu.dma_semaphore, #tpu.memory_space<semaphore_mem>>
      %145 = tpu.memref_squeeze %144 : memref<1x!tpu.dma_semaphore, #tpu.memory_space<semaphore_mem>> -> memref<!tpu.dma_semaphore, #tpu.memory_space<semaphore_mem>>
      tpu.enqueue_dma source(%142 : memref<1x32xf32, #tpu.memory_space<any>>) target(%143 : memref<1x32xf32, #tpu.memory_space<vmem>>) target_semaphore(%145 : memref<!tpu.dma_semaphore, #tpu.memory_space<semaphore_mem>>)
      %c8_i32_97 = arith.constant 8 : i32
      %146 = arith.muli %arg0, %c8_i32_97 : i32
      %c1_i32_98 = arith.constant 1 : i32
      %147 = arith.addi %146, %c1_i32_98 : i32
      %148 = arith.index_cast %147 : i32 to index
      %149 = memref.load %arg3[%148] : memref<8xi32, #tpu.memory_space<smem>>
      %c1_i32_99 = arith.constant 1 : i32
      %c0_i32_100 = arith.constant 0 : i32
      %150 = tpu.memref_slice %arg5[%149, %c0_i32_100] : memref<100x32xf32, #tpu.memory_space<any>> -> memref<1x32xf32, #tpu.memory_space<any>>
      %c1_i32_101 = arith.constant 1 : i32
      %c0_i32_102 = arith.constant 0 : i32
      %151 = tpu.memref_slice %arg8[%c1_i32_101, %c0_i32_102] : memref<8x32xf32, #tpu.memory_space<vmem>> -> memref<1x32xf32, #tpu.memory_space<vmem>>
      %152 = tpu.memref_slice %arg10[%c1_i32_99] : memref<8x!tpu.dma_semaphore, #tpu.memory_space<semaphore_mem>> -> memref<1x!tpu.dma_semaphore, #tpu.memory_space<semaphore_mem>>
      %153 = tpu.memref_squeeze %152 : memref<1x!tpu.dma_semaphore, #tpu.memory_space<semaphore_mem>> -> memref<!tpu.dma_semaphore, #tpu.memory_space<semaphore_mem>>
      tpu.enqueue_dma source(%150 : memref<1x32xf32, #tpu.memory_space<any>>) target(%151 : memref<1x32xf32, #tpu.memory_space<vmem>>) target_semaphore(%153 : memref<!tpu.dma_semaphore, #tpu.memory_space<semaphore_mem>>)
      %c8_i32_103 = arith.constant 8 : i32
      %154 = arith.muli %arg0, %c8_i32_103 : i32
      %c2_i32_104 = arith.constant 2 : i32
      %155 = arith.addi %154, %c2_i32_104 : i32
      %156 = arith.index_cast %155 : i32 to index
      %157 = memref.load %arg3[%156] : memref<8xi32, #tpu.memory_space<smem>>
      %c2_i32_105 = arith.constant 2 : i32
      %c0_i32_106 = arith.constant 0 : i32
      %158 = tpu.memref_slice %arg5[%157, %c0_i32_106] : memref<100x32xf32, #tpu.memory_space<any>> -> memref<1x32xf32, #tpu.memory_space<any>>
      %c2_i32_107 = arith.constant 2 : i32
      %c0_i32_108 = arith.constant 0 : i32
      %159 = tpu.memref_slice %arg8[%c2_i32_107, %c0_i32_108] : memref<8x32xf32, #tpu.memory_space<vmem>> -> memref<1x32xf32, #tpu.memory_space<vmem>>
      %160 = tpu.memref_slice %arg10[%c2_i32_105] : memref<8x!tpu.dma_semaphore, #tpu.memory_space<semaphore_mem>> -> memref<1x!tpu.dma_semaphore, #tpu.memory_space<semaphore_mem>>
      %161 = tpu.memref_squeeze %160 : memref<1x!tpu.dma_semaphore, #tpu.memory_space<semaphore_mem>> -> memref<!tpu.dma_semaphore, #tpu.memory_space<semaphore_mem>>
      tpu.enqueue_dma source(%158 : memref<1x32xf32, #tpu.memory_space<any>>) target(%159 : memref<1x32xf32, #tpu.memory_space<vmem>>) target_semaphore(%161 : memref<!tpu.dma_semaphore, #tpu.memory_space<semaphore_mem>>)
      %c8_i32_109 = arith.constant 8 : i32
      %162 = arith.muli %arg0, %c8_i32_109 : i32
      %c3_i32_110 = arith.constant 3 : i32
      %163 = arith.addi %162, %c3_i32_110 : i32
      %164 = arith.index_cast %163 : i32 to index
      %165 = memref.load %arg3[%164] : memref<8xi32, #tpu.memory_space<smem>>
      %c3_i32_111 = arith.constant 3 : i32
      %c0_i32_112 = arith.constant 0 : i32
      %166 = tpu.memref_slice %arg5[%165, %c0_i32_112] : memref<100x32xf32, #tpu.memory_space<any>> -> memref<1x32xf32, #tpu.memory_space<any>>
      %c3_i32_113 = arith.constant 3 : i32
      %c0_i32_114 = arith.constant 0 : i32
      %167 = tpu.memref_slice %arg8[%c3_i32_113, %c0_i32_114] : memref<8x32xf32, #tpu.memory_space<vmem>> -> memref<1x32xf32, #tpu.memory_space<vmem>>
      %168 = tpu.memref_slice %arg10[%c3_i32_111] : memref<8x!tpu.dma_semaphore, #tpu.memory_space<semaphore_mem>> -> memref<1x!tpu.dma_semaphore, #tpu.memory_space<semaphore_mem>>
      %169 = tpu.memref_squeeze %168 : memref<1x!tpu.dma_semaphore, #tpu.memory_space<semaphore_mem>> -> memref<!tpu.dma_semaphore, #tpu.memory_space<semaphore_mem>>
      tpu.enqueue_dma source(%166 : memref<1x32xf32, #tpu.memory_space<any>>) target(%167 : memref<1x32xf32, #tpu.memory_space<vmem>>) target_semaphore(%169 : memref<!tpu.dma_semaphore, #tpu.memory_space<semaphore_mem>>)
      %c8_i32_115 = arith.constant 8 : i32
      %170 = arith.muli %arg0, %c8_i32_115 : i32
      %c4_i32_116 = arith.constant 4 : i32
      %171 = arith.addi %170, %c4_i32_116 : i32
      %172 = arith.index_cast %171 : i32 to index
      %173 = memref.load %arg3[%172] : memref<8xi32, #tpu.memory_space<smem>>
      %c4_i32_117 = arith.constant 4 : i32
      %c0_i32_118 = arith.constant 0 : i32
      %174 = tpu.memref_slice %arg5[%173, %c0_i32_118] : memref<100x32xf32, #tpu.memory_space<any>> -> memref<1x32xf32, #tpu.memory_space<any>>
      %c4_i32_119 = arith.constant 4 : i32
      %c0_i32_120 = arith.constant 0 : i32
      %175 = tpu.memref_slice %arg8[%c4_i32_119, %c0_i32_120] : memref<8x32xf32, #tpu.memory_space<vmem>> -> memref<1x32xf32, #tpu.memory_space<vmem>>
      %176 = tpu.memref_slice %arg10[%c4_i32_117] : memref<8x!tpu.dma_semaphore, #tpu.memory_space<semaphore_mem>> -> memref<1x!tpu.dma_semaphore, #tpu.memory_space<semaphore_mem>>
      %177 = tpu.memref_squeeze %176 : memref<1x!tpu.dma_semaphore, #tpu.memory_space<semaphore_mem>> -> memref<!tpu.dma_semaphore, #tpu.memory_space<semaphore_mem>>
      tpu.enqueue_dma source(%174 : memref<1x32xf32, #tpu.memory_space<any>>) target(%175 : memref<1x32xf32, #tpu.memory_space<vmem>>) target_semaphore(%177 : memref<!tpu.dma_semaphore, #tpu.memory_space<semaphore_mem>>)
      %c8_i32_121 = arith.constant 8 : i32
      %178 = arith.muli %arg0, %c8_i32_121 : i32
      %c5_i32_122 = arith.constant 5 : i32
      %179 = arith.addi %178, %c5_i32_122 : i32
      %180 = arith.index_cast %179 : i32 to index
      %181 = memref.load %arg3[%180] : memref<8xi32, #tpu.memory_space<smem>>
      %c5_i32_123 = arith.constant 5 : i32
      %c0_i32_124 = arith.constant 0 : i32
      %182 = tpu.memref_slice %arg5[%181, %c0_i32_124] : memref<100x32xf32, #tpu.memory_space<any>> -> memref<1x32xf32, #tpu.memory_space<any>>
      %c5_i32_125 = arith.constant 5 : i32
      %c0_i32_126 = arith.constant 0 : i32
      %183 = tpu.memref_slice %arg8[%c5_i32_125, %c0_i32_126] : memref<8x32xf32, #tpu.memory_space<vmem>> -> memref<1x32xf32, #tpu.memory_space<vmem>>
      %184 = tpu.memref_slice %arg10[%c5_i32_123] : memref<8x!tpu.dma_semaphore, #tpu.memory_space<semaphore_mem>> -> memref<1x!tpu.dma_semaphore, #tpu.memory_space<semaphore_mem>>
      %185 = tpu.memref_squeeze %184 : memref<1x!tpu.dma_semaphore, #tpu.memory_space<semaphore_mem>> -> memref<!tpu.dma_semaphore, #tpu.memory_space<semaphore_mem>>
      tpu.enqueue_dma source(%182 : memref<1x32xf32, #tpu.memory_space<any>>) target(%183 : memref<1x32xf32, #tpu.memory_space<vmem>>) target_semaphore(%185 : memref<!tpu.dma_semaphore, #tpu.memory_space<semaphore_mem>>)
      %c8_i32_127 = arith.constant 8 : i32
      %186 = arith.muli %arg0, %c8_i32_127 : i32
      %c6_i32_128 = arith.constant 6 : i32
      %187 = arith.addi %186, %c6_i32_128 : i32
      %188 = arith.index_cast %187 : i32 to index
      %189 = memref.load %arg3[%188] : memref<8xi32, #tpu.memory_space<smem>>
      %c6_i32_129 = arith.constant 6 : i32
      %c0_i32_130 = arith.constant 0 : i32
      %190 = tpu.memref_slice %arg5[%189, %c0_i32_130] : memref<100x32xf32, #tpu.memory_space<any>> -> memref<1x32xf32, #tpu.memory_space<any>>
      %c6_i32_131 = arith.constant 6 : i32
      %c0_i32_132 = arith.constant 0 : i32
      %191 = tpu.memref_slice %arg8[%c6_i32_131, %c0_i32_132] : memref<8x32xf32, #tpu.memory_space<vmem>> -> memref<1x32xf32, #tpu.memory_space<vmem>>
      %192 = tpu.memref_slice %arg10[%c6_i32_129] : memref<8x!tpu.dma_semaphore, #tpu.memory_space<semaphore_mem>> -> memref<1x!tpu.dma_semaphore, #tpu.memory_space<semaphore_mem>>
      %193 = tpu.memref_squeeze %192 : memref<1x!tpu.dma_semaphore, #tpu.memory_space<semaphore_mem>> -> memref<!tpu.dma_semaphore, #tpu.memory_space<semaphore_mem>>
      tpu.enqueue_dma source(%190 : memref<1x32xf32, #tpu.memory_space<any>>) target(%191 : memref<1x32xf32, #tpu.memory_space<vmem>>) target_semaphore(%193 : memref<!tpu.dma_semaphore, #tpu.memory_space<semaphore_mem>>)
      %c8_i32_133 = arith.constant 8 : i32
      %194 = arith.muli %arg0, %c8_i32_133 : i32
      %c7_i32_134 = arith.constant 7 : i32
      %195 = arith.addi %194, %c7_i32_134 : i32
      %196 = arith.index_cast %195 : i32 to index
      %197 = memref.load %arg3[%196] : memref<8xi32, #tpu.memory_space<smem>>
      %c7_i32_135 = arith.constant 7 : i32
      %c0_i32_136 = arith.constant 0 : i32
      %198 = tpu.memref_slice %arg5[%197, %c0_i32_136] : memref<100x32xf32, #tpu.memory_space<any>> -> memref<1x32xf32, #tpu.memory_space<any>>
      %c7_i32_137 = arith.constant 7 : i32
      %c0_i32_138 = arith.constant 0 : i32
      %199 = tpu.memref_slice %arg8[%c7_i32_137, %c0_i32_138] : memref<8x32xf32, #tpu.memory_space<vmem>> -> memref<1x32xf32, #tpu.memory_space<vmem>>
      %200 = tpu.memref_slice %arg10[%c7_i32_135] : memref<8x!tpu.dma_semaphore, #tpu.memory_space<semaphore_mem>> -> memref<1x!tpu.dma_semaphore, #tpu.memory_space<semaphore_mem>>
      %201 = tpu.memref_squeeze %200 : memref<1x!tpu.dma_semaphore, #tpu.memory_space<semaphore_mem>> -> memref<!tpu.dma_semaphore, #tpu.memory_space<semaphore_mem>>
      tpu.enqueue_dma source(%198 : memref<1x32xf32, #tpu.memory_space<any>>) target(%199 : memref<1x32xf32, #tpu.memory_space<vmem>>) target_semaphore(%201 : memref<!tpu.dma_semaphore, #tpu.memory_space<semaphore_mem>>)
      %c0_i32_139 = arith.constant 0 : i32
      %c0_i32_140 = arith.constant 0 : i32
      %202 = tpu.memref_slice %arg5[%141, %c0_i32_140] : memref<100x32xf32, #tpu.memory_space<any>> -> memref<1x32xf32, #tpu.memory_space<any>>
      %c0_i32_141 = arith.constant 0 : i32
      %c0_i32_142 = arith.constant 0 : i32
      %203 = tpu.memref_slice %arg8[%c0_i32_141, %c0_i32_142] : memref<8x32xf32, #tpu.memory_space<vmem>> -> memref<1x32xf32, #tpu.memory_space<vmem>>
      %204 = tpu.memref_slice %arg10[%c0_i32_139] : memref<8x!tpu.dma_semaphore, #tpu.memory_space<semaphore_mem>> -> memref<1x!tpu.dma_semaphore, #tpu.memory_space<semaphore_mem>>
      %205 = tpu.memref_squeeze %204 : memref<1x!tpu.dma_semaphore, #tpu.memory_space<semaphore_mem>> -> memref<!tpu.dma_semaphore, #tpu.memory_space<semaphore_mem>>
      tpu.wait_dma2 semaphore(%205 : memref<!tpu.dma_semaphore, #tpu.memory_space<semaphore_mem>>) src(%202 : memref<1x32xf32, #tpu.memory_space<any>>) dst(%203 : memref<1x32xf32, #tpu.memory_space<vmem>>)
      %c1_i32_143 = arith.constant 1 : i32
      %c0_i32_144 = arith.constant 0 : i32
      %206 = tpu.memref_slice %arg5[%149, %c0_i32_144] : memref<100x32xf32, #tpu.memory_space<any>> -> memref<1x32xf32, #tpu.memory_space<any>>
      %c1_i32_145 = arith.constant 1 : i32
      %c0_i32_146 = arith.constant 0 : i32
      %207 = tpu.memref_slice %arg8[%c1_i32_145, %c0_i32_146] : memref<8x32xf32, #tpu.memory_space<vmem>> -> memref<1x32xf32, #tpu.memory_space<vmem>>
      %208 = tpu.memref_slice %arg10[%c1_i32_143] : memref<8x!tpu.dma_semaphore, #tpu.memory_space<semaphore_mem>> -> memref<1x!tpu.dma_semaphore, #tpu.memory_space<semaphore_mem>>
      %209 = tpu.memref_squeeze %208 : memref<1x!tpu.dma_semaphore, #tpu.memory_space<semaphore_mem>> -> memref<!tpu.dma_semaphore, #tpu.memory_space<semaphore_mem>>
      tpu.wait_dma2 semaphore(%209 : memref<!tpu.dma_semaphore, #tpu.memory_space<semaphore_mem>>) src(%206 : memref<1x32xf32, #tpu.memory_space<any>>) dst(%207 : memref<1x32xf32, #tpu.memory_space<vmem>>)
      %c2_i32_147 = arith.constant 2 : i32
      %c0_i32_148 = arith.constant 0 : i32
      %210 = tpu.memref_slice %arg5[%157, %c0_i32_148] : memref<100x32xf32, #tpu.memory_space<any>> -> memref<1x32xf32, #tpu.memory_space<any>>
      %c2_i32_149 = arith.constant 2 : i32
      %c0_i32_150 = arith.constant 0 : i32
      %211 = tpu.memref_slice %arg8[%c2_i32_149, %c0_i32_150] : memref<8x32xf32, #tpu.memory_space<vmem>> -> memref<1x32xf32, #tpu.memory_space<vmem>>
      %212 = tpu.memref_slice %arg10[%c2_i32_147] : memref<8x!tpu.dma_semaphore, #tpu.memory_space<semaphore_mem>> -> memref<1x!tpu.dma_semaphore, #tpu.memory_space<semaphore_mem>>
      %213 = tpu.memref_squeeze %212 : memref<1x!tpu.dma_semaphore, #tpu.memory_space<semaphore_mem>> -> memref<!tpu.dma_semaphore, #tpu.memory_space<semaphore_mem>>
      tpu.wait_dma2 semaphore(%213 : memref<!tpu.dma_semaphore, #tpu.memory_space<semaphore_mem>>) src(%210 : memref<1x32xf32, #tpu.memory_space<any>>) dst(%211 : memref<1x32xf32, #tpu.memory_space<vmem>>)
      %c3_i32_151 = arith.constant 3 : i32
      %c0_i32_152 = arith.constant 0 : i32
      %214 = tpu.memref_slice %arg5[%165, %c0_i32_152] : memref<100x32xf32, #tpu.memory_space<any>> -> memref<1x32xf32, #tpu.memory_space<any>>
      %c3_i32_153 = arith.constant 3 : i32
      %c0_i32_154 = arith.constant 0 : i32
      %215 = tpu.memref_slice %arg8[%c3_i32_153, %c0_i32_154] : memref<8x32xf32, #tpu.memory_space<vmem>> -> memref<1x32xf32, #tpu.memory_space<vmem>>
      %216 = tpu.memref_slice %arg10[%c3_i32_151] : memref<8x!tpu.dma_semaphore, #tpu.memory_space<semaphore_mem>> -> memref<1x!tpu.dma_semaphore, #tpu.memory_space<semaphore_mem>>
      %217 = tpu.memref_squeeze %216 : memref<1x!tpu.dma_semaphore, #tpu.memory_space<semaphore_mem>> -> memref<!tpu.dma_semaphore, #tpu.memory_space<semaphore_mem>>
      tpu.wait_dma2 semaphore(%217 : memref<!tpu.dma_semaphore, #tpu.memory_space<semaphore_mem>>) src(%214 : memref<1x32xf32, #tpu.memory_space<any>>) dst(%215 : memref<1x32xf32, #tpu.memory_space<vmem>>)
      %c4_i32_155 = arith.constant 4 : i32
      %c0_i32_156 = arith.constant 0 : i32
      %218 = tpu.memref_slice %arg5[%173, %c0_i32_156] : memref<100x32xf32, #tpu.memory_space<any>> -> memref<1x32xf32, #tpu.memory_space<any>>
      %c4_i32_157 = arith.constant 4 : i32
      %c0_i32_158 = arith.constant 0 : i32
      %219 = tpu.memref_slice %arg8[%c4_i32_157, %c0_i32_158] : memref<8x32xf32, #tpu.memory_space<vmem>> -> memref<1x32xf32, #tpu.memory_space<vmem>>
      %220 = tpu.memref_slice %arg10[%c4_i32_155] : memref<8x!tpu.dma_semaphore, #tpu.memory_space<semaphore_mem>> -> memref<1x!tpu.dma_semaphore, #tpu.memory_space<semaphore_mem>>
      %221 = tpu.memref_squeeze %220 : memref<1x!tpu.dma_semaphore, #tpu.memory_space<semaphore_mem>> -> memref<!tpu.dma_semaphore, #tpu.memory_space<semaphore_mem>>
      tpu.wait_dma2 semaphore(%221 : memref<!tpu.dma_semaphore, #tpu.memory_space<semaphore_mem>>) src(%218 : memref<1x32xf32, #tpu.memory_space<any>>) dst(%219 : memref<1x32xf32, #tpu.memory_space<vmem>>)
      %c5_i32_159 = arith.constant 5 : i32
      %c0_i32_160 = arith.constant 0 : i32
      %222 = tpu.memref_slice %arg5[%181, %c0_i32_160] : memref<100x32xf32, #tpu.memory_space<any>> -> memref<1x32xf32, #tpu.memory_space<any>>
      %c5_i32_161 = arith.constant 5 : i32
      %c0_i32_162 = arith.constant 0 : i32
      %223 = tpu.memref_slice %arg8[%c5_i32_161, %c0_i32_162] : memref<8x32xf32, #tpu.memory_space<vmem>> -> memref<1x32xf32, #tpu.memory_space<vmem>>
      %224 = tpu.memref_slice %arg10[%c5_i32_159] : memref<8x!tpu.dma_semaphore, #tpu.memory_space<semaphore_mem>> -> memref<1x!tpu.dma_semaphore, #tpu.memory_space<semaphore_mem>>
      %225 = tpu.memref_squeeze %224 : memref<1x!tpu.dma_semaphore, #tpu.memory_space<semaphore_mem>> -> memref<!tpu.dma_semaphore, #tpu.memory_space<semaphore_mem>>
      tpu.wait_dma2 semaphore(%225 : memref<!tpu.dma_semaphore, #tpu.memory_space<semaphore_mem>>) src(%222 : memref<1x32xf32, #tpu.memory_space<any>>) dst(%223 : memref<1x32xf32, #tpu.memory_space<vmem>>)
      %c6_i32_163 = arith.constant 6 : i32
      %c0_i32_164 = arith.constant 0 : i32
      %226 = tpu.memref_slice %arg5[%189, %c0_i32_164] : memref<100x32xf32, #tpu.memory_space<any>> -> memref<1x32xf32, #tpu.memory_space<any>>
      %c6_i32_165 = arith.constant 6 : i32
      %c0_i32_166 = arith.constant 0 : i32
      %227 = tpu.memref_slice %arg8[%c6_i32_165, %c0_i32_166] : memref<8x32xf32, #tpu.memory_space<vmem>> -> memref<1x32xf32, #tpu.memory_space<vmem>>
      %228 = tpu.memref_slice %arg10[%c6_i32_163] : memref<8x!tpu.dma_semaphore, #tpu.memory_space<semaphore_mem>> -> memref<1x!tpu.dma_semaphore, #tpu.memory_space<semaphore_mem>>
      %229 = tpu.memref_squeeze %228 : memref<1x!tpu.dma_semaphore, #tpu.memory_space<semaphore_mem>> -> memref<!tpu.dma_semaphore, #tpu.memory_space<semaphore_mem>>
      tpu.wait_dma2 semaphore(%229 : memref<!tpu.dma_semaphore, #tpu.memory_space<semaphore_mem>>) src(%226 : memref<1x32xf32, #tpu.memory_space<any>>) dst(%227 : memref<1x32xf32, #tpu.memory_space<vmem>>)
      %c7_i32_167 = arith.constant 7 : i32
      %c0_i32_168 = arith.constant 0 : i32
      %230 = tpu.memref_slice %arg5[%197, %c0_i32_168] : memref<100x32xf32, #tpu.memory_space<any>> -> memref<1x32xf32, #tpu.memory_space<any>>
      %c7_i32_169 = arith.constant 7 : i32
      %c0_i32_170 = arith.constant 0 : i32
      %231 = tpu.memref_slice %arg8[%c7_i32_169, %c0_i32_170] : memref<8x32xf32, #tpu.memory_space<vmem>> -> memref<1x32xf32, #tpu.memory_space<vmem>>
      %232 = tpu.memref_slice %arg10[%c7_i32_167] : memref<8x!tpu.dma_semaphore, #tpu.memory_space<semaphore_mem>> -> memref<1x!tpu.dma_semaphore, #tpu.memory_space<semaphore_mem>>
      %233 = tpu.memref_squeeze %232 : memref<1x!tpu.dma_semaphore, #tpu.memory_space<semaphore_mem>> -> memref<!tpu.dma_semaphore, #tpu.memory_space<semaphore_mem>>
      tpu.wait_dma2 semaphore(%233 : memref<!tpu.dma_semaphore, #tpu.memory_space<semaphore_mem>>) src(%230 : memref<1x32xf32, #tpu.memory_space<any>>) dst(%231 : memref<1x32xf32, #tpu.memory_space<vmem>>)
    } else {
    }
    %c8_i32 = arith.constant 8 : i32
    %8 = arith.muli %arg1, %c8_i32 : i32
    %c0_i32_4 = arith.constant 0 : i32
    %9 = arith.addi %8, %c0_i32_4 : i32
    %10 = arith.index_cast %9 : i32 to index
    %11 = memref.load %arg2[%10] : memref<8xi32, #tpu.memory_space<smem>>
    %c0_i32_5 = arith.constant 0 : i32
    %c0_i32_6 = arith.constant 0 : i32
    %12 = tpu.memref_slice %arg4[%11, %c0_i32_6] : memref<100x32xf32, #tpu.memory_space<any>> -> memref<1x32xf32, #tpu.memory_space<any>>
    %c0_i32_7 = arith.constant 0 : i32
    %c0_i32_8 = arith.constant 0 : i32
    %13 = tpu.memref_slice %arg7[%c0_i32_7, %c0_i32_8] : memref<8x32xf32, #tpu.memory_space<vmem>> -> memref<1x32xf32, #tpu.memory_space<vmem>>
    %14 = tpu.memref_slice %arg9[%c0_i32_5] : memref<8x!tpu.dma_semaphore, #tpu.memory_space<semaphore_mem>> -> memref<1x!tpu.dma_semaphore, #tpu.memory_space<semaphore_mem>>
    %15 = tpu.memref_squeeze %14 : memref<1x!tpu.dma_semaphore, #tpu.memory_space<semaphore_mem>> -> memref<!tpu.dma_semaphore, #tpu.memory_space<semaphore_mem>>
    tpu.enqueue_dma source(%12 : memref<1x32xf32, #tpu.memory_space<any>>) target(%13 : memref<1x32xf32, #tpu.memory_space<vmem>>) target_semaphore(%15 : memref<!tpu.dma_semaphore, #tpu.memory_space<semaphore_mem>>)
    %c8_i32_9 = arith.constant 8 : i32
    %16 = arith.muli %arg1, %c8_i32_9 : i32
    %c1_i32 = arith.constant 1 : i32
    %17 = arith.addi %16, %c1_i32 : i32
    %18 = arith.index_cast %17 : i32 to index
    %19 = memref.load %arg2[%18] : memref<8xi32, #tpu.memory_space<smem>>
    %c1_i32_10 = arith.constant 1 : i32
    %c0_i32_11 = arith.constant 0 : i32
    %20 = tpu.memref_slice %arg4[%19, %c0_i32_11] : memref<100x32xf32, #tpu.memory_space<any>> -> memref<1x32xf32, #tpu.memory_space<any>>
    %c1_i32_12 = arith.constant 1 : i32
    %c0_i32_13 = arith.constant 0 : i32
    %21 = tpu.memref_slice %arg7[%c1_i32_12, %c0_i32_13] : memref<8x32xf32, #tpu.memory_space<vmem>> -> memref<1x32xf32, #tpu.memory_space<vmem>>
    %22 = tpu.memref_slice %arg9[%c1_i32_10] : memref<8x!tpu.dma_semaphore, #tpu.memory_space<semaphore_mem>> -> memref<1x!tpu.dma_semaphore, #tpu.memory_space<semaphore_mem>>
    %23 = tpu.memref_squeeze %22 : memref<1x!tpu.dma_semaphore, #tpu.memory_space<semaphore_mem>> -> memref<!tpu.dma_semaphore, #tpu.memory_space<semaphore_mem>>
    tpu.enqueue_dma source(%20 : memref<1x32xf32, #tpu.memory_space<any>>) target(%21 : memref<1x32xf32, #tpu.memory_space<vmem>>) target_semaphore(%23 : memref<!tpu.dma_semaphore, #tpu.memory_space<semaphore_mem>>)
    %c8_i32_14 = arith.constant 8 : i32
    %24 = arith.muli %arg1, %c8_i32_14 : i32
    %c2_i32 = arith.constant 2 : i32
    %25 = arith.addi %24, %c2_i32 : i32
    %26 = arith.index_cast %25 : i32 to index
    %27 = memref.load %arg2[%26] : memref<8xi32, #tpu.memory_space<smem>>
    %c2_i32_15 = arith.constant 2 : i32
    %c0_i32_16 = arith.constant 0 : i32
    %28 = tpu.memref_slice %arg4[%27, %c0_i32_16] : memref<100x32xf32, #tpu.memory_space<any>> -> memref<1x32xf32, #tpu.memory_space<any>>
    %c2_i32_17 = arith.constant 2 : i32
    %c0_i32_18 = arith.constant 0 : i32
    %29 = tpu.memref_slice %arg7[%c2_i32_17, %c0_i32_18] : memref<8x32xf32, #tpu.memory_space<vmem>> -> memref<1x32xf32, #tpu.memory_space<vmem>>
    %30 = tpu.memref_slice %arg9[%c2_i32_15] : memref<8x!tpu.dma_semaphore, #tpu.memory_space<semaphore_mem>> -> memref<1x!tpu.dma_semaphore, #tpu.memory_space<semaphore_mem>>
    %31 = tpu.memref_squeeze %30 : memref<1x!tpu.dma_semaphore, #tpu.memory_space<semaphore_mem>> -> memref<!tpu.dma_semaphore, #tpu.memory_space<semaphore_mem>>
    tpu.enqueue_dma source(%28 : memref<1x32xf32, #tpu.memory_space<any>>) target(%29 : memref<1x32xf32, #tpu.memory_space<vmem>>) target_semaphore(%31 : memref<!tpu.dma_semaphore, #tpu.memory_space<semaphore_mem>>)
    %c8_i32_19 = arith.constant 8 : i32
    %32 = arith.muli %arg1, %c8_i32_19 : i32
    %c3_i32 = arith.constant 3 : i32
    %33 = arith.addi %32, %c3_i32 : i32
    %34 = arith.index_cast %33 : i32 to index
    %35 = memref.load %arg2[%34] : memref<8xi32, #tpu.memory_space<smem>>
    %c3_i32_20 = arith.constant 3 : i32
    %c0_i32_21 = arith.constant 0 : i32
    %36 = tpu.memref_slice %arg4[%35, %c0_i32_21] : memref<100x32xf32, #tpu.memory_space<any>> -> memref<1x32xf32, #tpu.memory_space<any>>
    %c3_i32_22 = arith.constant 3 : i32
    %c0_i32_23 = arith.constant 0 : i32
    %37 = tpu.memref_slice %arg7[%c3_i32_22, %c0_i32_23] : memref<8x32xf32, #tpu.memory_space<vmem>> -> memref<1x32xf32, #tpu.memory_space<vmem>>
    %38 = tpu.memref_slice %arg9[%c3_i32_20] : memref<8x!tpu.dma_semaphore, #tpu.memory_space<semaphore_mem>> -> memref<1x!tpu.dma_semaphore, #tpu.memory_space<semaphore_mem>>
    %39 = tpu.memref_squeeze %38 : memref<1x!tpu.dma_semaphore, #tpu.memory_space<semaphore_mem>> -> memref<!tpu.dma_semaphore, #tpu.memory_space<semaphore_mem>>
    tpu.enqueue_dma source(%36 : memref<1x32xf32, #tpu.memory_space<any>>) target(%37 : memref<1x32xf32, #tpu.memory_space<vmem>>) target_semaphore(%39 : memref<!tpu.dma_semaphore, #tpu.memory_space<semaphore_mem>>)
    %c8_i32_24 = arith.constant 8 : i32
    %40 = arith.muli %arg1, %c8_i32_24 : i32
    %c4_i32 = arith.constant 4 : i32
    %41 = arith.addi %40, %c4_i32 : i32
    %42 = arith.index_cast %41 : i32 to index
    %43 = memref.load %arg2[%42] : memref<8xi32, #tpu.memory_space<smem>>
    %c4_i32_25 = arith.constant 4 : i32
    %c0_i32_26 = arith.constant 0 : i32
    %44 = tpu.memref_slice %arg4[%43, %c0_i32_26] : memref<100x32xf32, #tpu.memory_space<any>> -> memref<1x32xf32, #tpu.memory_space<any>>
    %c4_i32_27 = arith.constant 4 : i32
    %c0_i32_28 = arith.constant 0 : i32
    %45 = tpu.memref_slice %arg7[%c4_i32_27, %c0_i32_28] : memref<8x32xf32, #tpu.memory_space<vmem>> -> memref<1x32xf32, #tpu.memory_space<vmem>>
    %46 = tpu.memref_slice %arg9[%c4_i32_25] : memref<8x!tpu.dma_semaphore, #tpu.memory_space<semaphore_mem>> -> memref<1x!tpu.dma_semaphore, #tpu.memory_space<semaphore_mem>>
    %47 = tpu.memref_squeeze %46 : memref<1x!tpu.dma_semaphore, #tpu.memory_space<semaphore_mem>> -> memref<!tpu.dma_semaphore, #tpu.memory_space<semaphore_mem>>
    tpu.enqueue_dma source(%44 : memref<1x32xf32, #tpu.memory_space<any>>) target(%45 : memref<1x32xf32, #tpu.memory_space<vmem>>) target_semaphore(%47 : memref<!tpu.dma_semaphore, #tpu.memory_space<semaphore_mem>>)
    %c8_i32_29 = arith.constant 8 : i32
    %48 = arith.muli %arg1, %c8_i32_29 : i32
    %c5_i32 = arith.constant 5 : i32
    %49 = arith.addi %48, %c5_i32 : i32
    %50 = arith.index_cast %49 : i32 to index
    %51 = memref.load %arg2[%50] : memref<8xi32, #tpu.memory_space<smem>>
    %c5_i32_30 = arith.constant 5 : i32
    %c0_i32_31 = arith.constant 0 : i32
    %52 = tpu.memref_slice %arg4[%51, %c0_i32_31] : memref<100x32xf32, #tpu.memory_space<any>> -> memref<1x32xf32, #tpu.memory_space<any>>
    %c5_i32_32 = arith.constant 5 : i32
    %c0_i32_33 = arith.constant 0 : i32
    %53 = tpu.memref_slice %arg7[%c5_i32_32, %c0_i32_33] : memref<8x32xf32, #tpu.memory_space<vmem>> -> memref<1x32xf32, #tpu.memory_space<vmem>>
    %54 = tpu.memref_slice %arg9[%c5_i32_30] : memref<8x!tpu.dma_semaphore, #tpu.memory_space<semaphore_mem>> -> memref<1x!tpu.dma_semaphore, #tpu.memory_space<semaphore_mem>>
    %55 = tpu.memref_squeeze %54 : memref<1x!tpu.dma_semaphore, #tpu.memory_space<semaphore_mem>> -> memref<!tpu.dma_semaphore, #tpu.memory_space<semaphore_mem>>
    tpu.enqueue_dma source(%52 : memref<1x32xf32, #tpu.memory_space<any>>) target(%53 : memref<1x32xf32, #tpu.memory_space<vmem>>) target_semaphore(%55 : memref<!tpu.dma_semaphore, #tpu.memory_space<semaphore_mem>>)
    %c8_i32_34 = arith.constant 8 : i32
    %56 = arith.muli %arg1, %c8_i32_34 : i32
    %c6_i32 = arith.constant 6 : i32
    %57 = arith.addi %56, %c6_i32 : i32
    %58 = arith.index_cast %57 : i32 to index
    %59 = memref.load %arg2[%58] : memref<8xi32, #tpu.memory_space<smem>>
    %c6_i32_35 = arith.constant 6 : i32
    %c0_i32_36 = arith.constant 0 : i32
    %60 = tpu.memref_slice %arg4[%59, %c0_i32_36] : memref<100x32xf32, #tpu.memory_space<any>> -> memref<1x32xf32, #tpu.memory_space<any>>
    %c6_i32_37 = arith.constant 6 : i32
    %c0_i32_38 = arith.constant 0 : i32
    %61 = tpu.memref_slice %arg7[%c6_i32_37, %c0_i32_38] : memref<8x32xf32, #tpu.memory_space<vmem>> -> memref<1x32xf32, #tpu.memory_space<vmem>>
    %62 = tpu.memref_slice %arg9[%c6_i32_35] : memref<8x!tpu.dma_semaphore, #tpu.memory_space<semaphore_mem>> -> memref<1x!tpu.dma_semaphore, #tpu.memory_space<semaphore_mem>>
    %63 = tpu.memref_squeeze %62 : memref<1x!tpu.dma_semaphore, #tpu.memory_space<semaphore_mem>> -> memref<!tpu.dma_semaphore, #tpu.memory_space<semaphore_mem>>
    tpu.enqueue_dma source(%60 : memref<1x32xf32, #tpu.memory_space<any>>) target(%61 : memref<1x32xf32, #tpu.memory_space<vmem>>) target_semaphore(%63 : memref<!tpu.dma_semaphore, #tpu.memory_space<semaphore_mem>>)
    %c8_i32_39 = arith.constant 8 : i32
    %64 = arith.muli %arg1, %c8_i32_39 : i32
    %c7_i32 = arith.constant 7 : i32
    %65 = arith.addi %64, %c7_i32 : i32
    %66 = arith.index_cast %65 : i32 to index
    %67 = memref.load %arg2[%66] : memref<8xi32, #tpu.memory_space<smem>>
    %c7_i32_40 = arith.constant 7 : i32
    %c0_i32_41 = arith.constant 0 : i32
    %68 = tpu.memref_slice %arg4[%67, %c0_i32_41] : memref<100x32xf32, #tpu.memory_space<any>> -> memref<1x32xf32, #tpu.memory_space<any>>
    %c7_i32_42 = arith.constant 7 : i32
    %c0_i32_43 = arith.constant 0 : i32
    %69 = tpu.memref_slice %arg7[%c7_i32_42, %c0_i32_43] : memref<8x32xf32, #tpu.memory_space<vmem>> -> memref<1x32xf32, #tpu.memory_space<vmem>>
    %70 = tpu.memref_slice %arg9[%c7_i32_40] : memref<8x!tpu.dma_semaphore, #tpu.memory_space<semaphore_mem>> -> memref<1x!tpu.dma_semaphore, #tpu.memory_space<semaphore_mem>>
    %71 = tpu.memref_squeeze %70 : memref<1x!tpu.dma_semaphore, #tpu.memory_space<semaphore_mem>> -> memref<!tpu.dma_semaphore, #tpu.memory_space<semaphore_mem>>
    tpu.enqueue_dma source(%68 : memref<1x32xf32, #tpu.memory_space<any>>) target(%69 : memref<1x32xf32, #tpu.memory_space<vmem>>) target_semaphore(%71 : memref<!tpu.dma_semaphore, #tpu.memory_space<semaphore_mem>>)
    %c0_i32_44 = arith.constant 0 : i32
    %c0_i32_45 = arith.constant 0 : i32
    %72 = tpu.memref_slice %arg4[%11, %c0_i32_45] : memref<100x32xf32, #tpu.memory_space<any>> -> memref<1x32xf32, #tpu.memory_space<any>>
    %c0_i32_46 = arith.constant 0 : i32
    %c0_i32_47 = arith.constant 0 : i32
    %73 = tpu.memref_slice %arg7[%c0_i32_46, %c0_i32_47] : memref<8x32xf32, #tpu.memory_space<vmem>> -> memref<1x32xf32, #tpu.memory_space<vmem>>
    %74 = tpu.memref_slice %arg9[%c0_i32_44] : memref<8x!tpu.dma_semaphore, #tpu.memory_space<semaphore_mem>> -> memref<1x!tpu.dma_semaphore, #tpu.memory_space<semaphore_mem>>
    %75 = tpu.memref_squeeze %74 : memref<1x!tpu.dma_semaphore, #tpu.memory_space<semaphore_mem>> -> memref<!tpu.dma_semaphore, #tpu.memory_space<semaphore_mem>>
    tpu.wait_dma2 semaphore(%75 : memref<!tpu.dma_semaphore, #tpu.memory_space<semaphore_mem>>) src(%72 : memref<1x32xf32, #tpu.memory_space<any>>) dst(%73 : memref<1x32xf32, #tpu.memory_space<vmem>>)
    %c1_i32_48 = arith.constant 1 : i32
    %c0_i32_49 = arith.constant 0 : i32
    %76 = tpu.memref_slice %arg4[%19, %c0_i32_49] : memref<100x32xf32, #tpu.memory_space<any>> -> memref<1x32xf32, #tpu.memory_space<any>>
    %c1_i32_50 = arith.constant 1 : i32
    %c0_i32_51 = arith.constant 0 : i32
    %77 = tpu.memref_slice %arg7[%c1_i32_50, %c0_i32_51] : memref<8x32xf32, #tpu.memory_space<vmem>> -> memref<1x32xf32, #tpu.memory_space<vmem>>
    %78 = tpu.memref_slice %arg9[%c1_i32_48] : memref<8x!tpu.dma_semaphore, #tpu.memory_space<semaphore_mem>> -> memref<1x!tpu.dma_semaphore, #tpu.memory_space<semaphore_mem>>
    %79 = tpu.memref_squeeze %78 : memref<1x!tpu.dma_semaphore, #tpu.memory_space<semaphore_mem>> -> memref<!tpu.dma_semaphore, #tpu.memory_space<semaphore_mem>>
    tpu.wait_dma2 semaphore(%79 : memref<!tpu.dma_semaphore, #tpu.memory_space<semaphore_mem>>) src(%76 : memref<1x32xf32, #tpu.memory_space<any>>) dst(%77 : memref<1x32xf32, #tpu.memory_space<vmem>>)
    %c2_i32_52 = arith.constant 2 : i32
    %c0_i32_53 = arith.constant 0 : i32
    %80 = tpu.memref_slice %arg4[%27, %c0_i32_53] : memref<100x32xf32, #tpu.memory_space<any>> -> memref<1x32xf32, #tpu.memory_space<any>>
    %c2_i32_54 = arith.constant 2 : i32
    %c0_i32_55 = arith.constant 0 : i32
    %81 = tpu.memref_slice %arg7[%c2_i32_54, %c0_i32_55] : memref<8x32xf32, #tpu.memory_space<vmem>> -> memref<1x32xf32, #tpu.memory_space<vmem>>
    %82 = tpu.memref_slice %arg9[%c2_i32_52] : memref<8x!tpu.dma_semaphore, #tpu.memory_space<semaphore_mem>> -> memref<1x!tpu.dma_semaphore, #tpu.memory_space<semaphore_mem>>
    %83 = tpu.memref_squeeze %82 : memref<1x!tpu.dma_semaphore, #tpu.memory_space<semaphore_mem>> -> memref<!tpu.dma_semaphore, #tpu.memory_space<semaphore_mem>>
    tpu.wait_dma2 semaphore(%83 : memref<!tpu.dma_semaphore, #tpu.memory_space<semaphore_mem>>) src(%80 : memref<1x32xf32, #tpu.memory_space<any>>) dst(%81 : memref<1x32xf32, #tpu.memory_space<vmem>>)
    %c3_i32_56 = arith.constant 3 : i32
    %c0_i32_57 = arith.constant 0 : i32
    %84 = tpu.memref_slice %arg4[%35, %c0_i32_57] : memref<100x32xf32, #tpu.memory_space<any>> -> memref<1x32xf32, #tpu.memory_space<any>>
    %c3_i32_58 = arith.constant 3 : i32
    %c0_i32_59 = arith.constant 0 : i32
    %85 = tpu.memref_slice %arg7[%c3_i32_58, %c0_i32_59] : memref<8x32xf32, #tpu.memory_space<vmem>> -> memref<1x32xf32, #tpu.memory_space<vmem>>
    %86 = tpu.memref_slice %arg9[%c3_i32_56] : memref<8x!tpu.dma_semaphore, #tpu.memory_space<semaphore_mem>> -> memref<1x!tpu.dma_semaphore, #tpu.memory_space<semaphore_mem>>
    %87 = tpu.memref_squeeze %86 : memref<1x!tpu.dma_semaphore, #tpu.memory_space<semaphore_mem>> -> memref<!tpu.dma_semaphore, #tpu.memory_space<semaphore_mem>>
    tpu.wait_dma2 semaphore(%87 : memref<!tpu.dma_semaphore, #tpu.memory_space<semaphore_mem>>) src(%84 : memref<1x32xf32, #tpu.memory_space<any>>) dst(%85 : memref<1x32xf32, #tpu.memory_space<vmem>>)
    %c4_i32_60 = arith.constant 4 : i32
    %c0_i32_61 = arith.constant 0 : i32
    %88 = tpu.memref_slice %arg4[%43, %c0_i32_61] : memref<100x32xf32, #tpu.memory_space<any>> -> memref<1x32xf32, #tpu.memory_space<any>>
    %c4_i32_62 = arith.constant 4 : i32
    %c0_i32_63 = arith.constant 0 : i32
    %89 = tpu.memref_slice %arg7[%c4_i32_62, %c0_i32_63] : memref<8x32xf32, #tpu.memory_space<vmem>> -> memref<1x32xf32, #tpu.memory_space<vmem>>
    %90 = tpu.memref_slice %arg9[%c4_i32_60] : memref<8x!tpu.dma_semaphore, #tpu.memory_space<semaphore_mem>> -> memref<1x!tpu.dma_semaphore, #tpu.memory_space<semaphore_mem>>
    %91 = tpu.memref_squeeze %90 : memref<1x!tpu.dma_semaphore, #tpu.memory_space<semaphore_mem>> -> memref<!tpu.dma_semaphore, #tpu.memory_space<semaphore_mem>>
    tpu.wait_dma2 semaphore(%91 : memref<!tpu.dma_semaphore, #tpu.memory_space<semaphore_mem>>) src(%88 : memref<1x32xf32, #tpu.memory_space<any>>) dst(%89 : memref<1x32xf32, #tpu.memory_space<vmem>>)
    %c5_i32_64 = arith.constant 5 : i32
    %c0_i32_65 = arith.constant 0 : i32
    %92 = tpu.memref_slice %arg4[%51, %c0_i32_65] : memref<100x32xf32, #tpu.memory_space<any>> -> memref<1x32xf32, #tpu.memory_space<any>>
    %c5_i32_66 = arith.constant 5 : i32
    %c0_i32_67 = arith.constant 0 : i32
    %93 = tpu.memref_slice %arg7[%c5_i32_66, %c0_i32_67] : memref<8x32xf32, #tpu.memory_space<vmem>> -> memref<1x32xf32, #tpu.memory_space<vmem>>
    %94 = tpu.memref_slice %arg9[%c5_i32_64] : memref<8x!tpu.dma_semaphore, #tpu.memory_space<semaphore_mem>> -> memref<1x!tpu.dma_semaphore, #tpu.memory_space<semaphore_mem>>
    %95 = tpu.memref_squeeze %94 : memref<1x!tpu.dma_semaphore, #tpu.memory_space<semaphore_mem>> -> memref<!tpu.dma_semaphore, #tpu.memory_space<semaphore_mem>>
    tpu.wait_dma2 semaphore(%95 : memref<!tpu.dma_semaphore, #tpu.memory_space<semaphore_mem>>) src(%92 : memref<1x32xf32, #tpu.memory_space<any>>) dst(%93 : memref<1x32xf32, #tpu.memory_space<vmem>>)
    %c6_i32_68 = arith.constant 6 : i32
    %c0_i32_69 = arith.constant 0 : i32
    %96 = tpu.memref_slice %arg4[%59, %c0_i32_69] : memref<100x32xf32, #tpu.memory_space<any>> -> memref<1x32xf32, #tpu.memory_space<any>>
    %c6_i32_70 = arith.constant 6 : i32
    %c0_i32_71 = arith.constant 0 : i32
    %97 = tpu.memref_slice %arg7[%c6_i32_70, %c0_i32_71] : memref<8x32xf32, #tpu.memory_space<vmem>> -> memref<1x32xf32, #tpu.memory_space<vmem>>
    %98 = tpu.memref_slice %arg9[%c6_i32_68] : memref<8x!tpu.dma_semaphore, #tpu.memory_space<semaphore_mem>> -> memref<1x!tpu.dma_semaphore, #tpu.memory_space<semaphore_mem>>
    %99 = tpu.memref_squeeze %98 : memref<1x!tpu.dma_semaphore, #tpu.memory_space<semaphore_mem>> -> memref<!tpu.dma_semaphore, #tpu.memory_space<semaphore_mem>>
    tpu.wait_dma2 semaphore(%99 : memref<!tpu.dma_semaphore, #tpu.memory_space<semaphore_mem>>) src(%96 : memref<1x32xf32, #tpu.memory_space<any>>) dst(%97 : memref<1x32xf32, #tpu.memory_space<vmem>>)
    %c7_i32_72 = arith.constant 7 : i32
    %c0_i32_73 = arith.constant 0 : i32
    %100 = tpu.memref_slice %arg4[%67, %c0_i32_73] : memref<100x32xf32, #tpu.memory_space<any>> -> memref<1x32xf32, #tpu.memory_space<any>>
    %c7_i32_74 = arith.constant 7 : i32
    %c0_i32_75 = arith.constant 0 : i32
    %101 = tpu.memref_slice %arg7[%c7_i32_74, %c0_i32_75] : memref<8x32xf32, #tpu.memory_space<vmem>> -> memref<1x32xf32, #tpu.memory_space<vmem>>
    %102 = tpu.memref_slice %arg9[%c7_i32_72] : memref<8x!tpu.dma_semaphore, #tpu.memory_space<semaphore_mem>> -> memref<1x!tpu.dma_semaphore, #tpu.memory_space<semaphore_mem>>
    %103 = tpu.memref_squeeze %102 : memref<1x!tpu.dma_semaphore, #tpu.memory_space<semaphore_mem>> -> memref<!tpu.dma_semaphore, #tpu.memory_space<semaphore_mem>>
    tpu.wait_dma2 semaphore(%103 : memref<!tpu.dma_semaphore, #tpu.memory_space<semaphore_mem>>) src(%100 : memref<1x32xf32, #tpu.memory_space<any>>) dst(%101 : memref<1x32xf32, #tpu.memory_space<vmem>>)
    %c0 = arith.constant 0 : index
    %c0_76 = arith.constant 0 : index
    %104 = vector.load %arg8[%c0, %c0_76] : memref<8x32xf32, #tpu.memory_space<vmem>>, vector<8x32xf32>
    %c0_77 = arith.constant 0 : index
    %c0_78 = arith.constant 0 : index
    %105 = vector.load %arg7[%c0_77, %c0_78] : memref<8x32xf32, #tpu.memory_space<vmem>>, vector<8x32xf32>
    %cst = arith.constant dense<0.000000e+00> : vector<8x8xf32>
    %106 = tpu.matmul %104, %105, %cst {dimension_numbers = #tpu.dot_dimension_numbers<[1], [1], [0], [0], [0, 0, 1, 0], [], []>} : vector<8x32xf32>, vector<8x32xf32>, vector<8x8xf32> -> vector<8x8xf32>
    %cst_79 = arith.constant 0.000000e+00 : f32
    %107 = vector.broadcast %cst_79 : f32 to vector<8x8xf32>
    %108 = arith.minimumf %106, %107 : vector<8x8xf32>
    %109 = math.absf %106 : vector<8x8xf32>
    %cst_80 = arith.constant 0.000000e+00 : f32
    %110 = vector.broadcast %cst_80 : f32 to vector<8x8xf32>
    %111 = arith.subf %110, %109 : vector<8x8xf32>
    %112 = math.exp %111 : vector<8x8xf32>
    %113 = math.log1p %112 : vector<8x8xf32>
    %114 = arith.subf %108, %113 : vector<8x8xf32>
    %115 = tpu.iota {dimensions = array<i32: 0>} : vector<8x8xi32>
    %c8_i32_81 = arith.constant 8 : i32
    %116 = arith.muli %arg0, %c8_i32_81 : i32
    %117 = vector.broadcast %116 : i32 to vector<8x8xi32>
    %118 = arith.addi %115, %117 : vector<8x8xi32>
    %119 = tpu.iota {dimensions = array<i32: 1>} : vector<8x8xi32>
    %c8_i32_82 = arith.constant 8 : i32
    %120 = arith.muli %arg1, %c8_i32_82 : i32
    %121 = vector.broadcast %120 : i32 to vector<8x8xi32>
    %122 = arith.addi %119, %121 : vector<8x8xi32>
    %c8_i32_83 = arith.constant 8 : i32
    %123 = vector.broadcast %c8_i32_83 : i32 to vector<8x8xi32>
    %124 = arith.cmpi slt, %118, %123 : vector<8x8xi32>
    %c8_i32_84 = arith.constant 8 : i32
    %125 = vector.broadcast %c8_i32_84 : i32 to vector<8x8xi32>
    %126 = arith.cmpi slt, %122, %125 : vector<8x8xi32>
    %127 = arith.andi %124, %126 : vector<8x8xi1>
    %cst_85 = arith.constant 0.000000e+00 : f32
    %128 = vector.broadcast %cst_85 : f32 to vector<8x8xf32>
    %129 = arith.select %127, %114, %128 : vector<8x8xi1>, vector<8x8xf32>
    %c0_86 = arith.constant 0 : index
    %c0_87 = arith.constant 0 : index
    %130 = vector.load %arg6[%c0_86, %c0_87] : memref<1x1xf32, #tpu.memory_space<vmem>>, vector<1x1xf32>
    %131 = vector.shape_cast %129 : vector<8x8xf32> to vector<1x8x8xf32>
    %cst_88 = arith.constant dense<0.000000e+00> : vector<1xf32>
    %132 = vector.multi_reduction <add>, %131, %cst_88 [1, 2] : vector<1x8x8xf32> to vector<1xf32>
    %133 = vector.shape_cast %132 : vector<1xf32> to vector<1x1x1xf32>
    %134 = vector.extract %133[0, 0, 0] : f32 from vector<1x1x1xf32>
    %135 = vector.broadcast %134 : f32 to vector<1x1xf32>
    %136 = arith.subf %130, %135 : vector<1x1xf32>
    %c0_89 = arith.constant 0 : index
    %c0_90 = arith.constant 0 : index
    %137 = vector.load %arg6[%c0_89, %c0_90] : memref<1x1xf32, #tpu.memory_space<vmem>>, vector<1x1xf32>
    tpu.vector_store %arg6[%c0_89, %c0_90], %136 {strides = array<i32>} : memref<1x1xf32, #tpu.memory_space<vmem>>, vector<1x1xf32>,
    return
  }
  func.func @transform_2(%arg0: i32, %arg1: i32, %arg2: memref<8xi32, #tpu.memory_space<smem>>, %arg3: memref<8xi32, #tpu.memory_space<smem>>) -> (i32, i32) {
    %c0_i32 = arith.constant 0 : i32
    %c0_i32_0 = arith.constant 0 : i32
    %c0_i32_1 = arith.constant 0 : i32
    return %c0_i32, %c0_i32_0 : i32, i32
  }
}

</mosaic_0001>

<bundles_post_ra>
// kernel: skip_ns_forward.1
= control target key start
LH: loop header
LB: loop body
LE: loop exit
PB: predicated region body
PF: predicated region fallthrough
CT: control target
= control target key end

     0   :  { %s1536_s0 = inlined_call_operand.vmem [shape: s32[8], index: 0, kind: input, shape index: {}]   ;;  %s1537_s2 = inlined_call_operand.vmem [shape: f32[100,32], index: 2, kind: input, shape index: {}]   ;;  %s1538_s3 = inlined_call_operand.vmem [shape: f32[100,32], index: 3, kind: input, shape index: {}]   ;;  %s1539_s4 = inlined_call_operand.hbm [shape: f32[1,1], index: 4, kind: output, shape index: {}]   ;;  %s1540_s1 = inlined_call_operand.vmem [shape: s32[8], index: 1, kind: input, shape index: {}]  }
   0x1   :  { %s9_s17 = sshll.u32 %s1536_s0, 4  ;;  %s13_s20 = sshll.u32 %s1540_s1, 4  ;;  %s10_s17 = int_to_ptr.vmem [resolvable:$true] %s9_s17  ;;  %s14_s20 = int_to_ptr.vmem [resolvable:$true] %s13_s20 }
   0x2   :  { %s1364_s21 = scalar_lea.vmem %s10_s17, 16  ;;  %p1369_p1 = scmp.lt.s32.totalorder %s10_s17, %s10_s17 }
   0x3   :  { %p1365_p0 = scmp.ne.s32.totalorder %s10_s17, %s1364_s21  ;;  %p1370_p2 = scmp.lt.s32.totalorder %s1364_s21, %s1364_s21 }
   0x5   :  { %p1371_p3 = por %p1370_p2, %p1369_p1 }
   0x7   :  { %p1372_p4 = pnand %p1371_p3, %p1365_p0 }
   0x9   :  { %1375 = shalt.err (!%p1372_p4)  }
   0xa   :  { %s1444_s22 = smov [#allocation7]   ;;  %s1376_s23 = scalar_lea.vmem %s14_s20, 16 }
   0xb   :  { %12 = dma.vmem_to_smem %s10_s17, 16, %s1444_s22, [#allocation6] }
   0xc   :  { %p1377_p5 = scmp.ne.s32.totalorder %s14_s20, %s1376_s23  ;;  %p1381_p6 = scmp.lt.s32.totalorder %s14_s20, %s14_s20 }
   0xd   :  { %p1382_p7 = scmp.lt.s32.totalorder %s1376_s23, %s1376_s23 }
   0xf   :  { %p1383_p8 = por %p1382_p7, %p1381_p6 }
  0x11   :  { %p1384_p9 = pnand %p1383_p8, %p1377_p5 }
  0x13   :  { %1387 = shalt.err (!%p1384_p9)  }
  0x14   :  { %s1445_s0 = smov [#allocation8]  }
  0x15   :  { %16 = dma.vmem_to_smem %s14_s20, 16, %s1445_s0, [#allocation6] }
  0x16   :  { %1408 = dma.done.wait [#allocation6], 32 }
  0x17   :  { %1409 = vsyncadd [#allocation6], 4294967264 }
  0x18   :  { %18 = sfence }
  0x19   :  { %19 = vsyncpa [#allocation10], 0  ;;  %vm26_vm0 = vcmask 0   ;;  %s32_s1 = sld [smem:[#allocation8]]  ;;  %v1446_v0 = vmov 0.0  }
  0x1a   :  { %27 = vst.msk [vmem:[#allocation9] sm:$0x1] %vm26_vm0, %v1446_v0 }
  0x1f   :  { %s33_s26 = scalar_lea.vmem %s1538_s3, %s32_s1 }
  0x20   :  { %v52_v1 = vld [vmem:[%s33_s26] sm:$0x1] }
  0x21   :  { %53 = vst [vmem:[#allocation3] sm:$0x1] %v52_v1 }
  0x22   :  { %79 = vsyncadd [#allocation5], 16  ;;  %s1314_s27 = sld [smem:[#allocation8 + $0x1]] }
  0x28   :  { %s82_s30 = scalar_lea.vmem %s1538_s3, %s1314_s27 }
  0x29   :  { %v103_v2 = vld [vmem:[%s82_s30] sm:$0x1] }
  0x2a   :  { %104 = vst [vmem:[#allocation3 + $0x1] sm:$0x1] %v103_v2 }
  0x2b   :  { %130 = vsyncadd [#allocation5 + $0x1], 16  ;;  %s1315_s5 = sld [smem:[#allocation8 + $0x2]] }
  0x31   :  { %s133_s8 = scalar_lea.vmem %s1538_s3, %s1315_s5 }
  0x32   :  { %v154_v3 = vld [vmem:[%s133_s8] sm:$0x1] }
  0x33   :  { %155 = vst [vmem:[#allocation3 + $0x2] sm:$0x1] %v154_v3 }
  0x34   :  { %181 = vsyncadd [#allocation5 + $0x2], 16  ;;  %s1316_s9 = sld [smem:[#allocation8 + $0x3]] }
  0x3a   :  { %s184_s12 = scalar_lea.vmem %s1538_s3, %s1316_s9 }
  0x3b   :  { %v205_v4 = vld [vmem:[%s184_s12] sm:$0x1] }
  0x3c   :  { %206 = vst [vmem:[#allocation3 + $0x3] sm:$0x1] %v205_v4 }
  0x3d   :  { %232 = vsyncadd [#allocation5 + $0x3], 16  ;;  %s1317_s13 = sld [smem:[#allocation8 + $0x4]] }
  0x43   :  { %s235_s16 = scalar_lea.vmem %s1538_s3, %s1317_s13 }
  0x44   :  { %v256_v5 = vld [vmem:[%s235_s16] sm:$0x1] }
  0x45   :  { %257 = vst [vmem:[#allocation3 + $0x4] sm:$0x1] %v256_v5 }
  0x46   :  { %283 = vsyncadd [#allocation5 + $0x4], 16  ;;  %s1318_s17 = sld [smem:[#allocation8 + $0x5]] }
  0x4c   :  { %s286_s20 = scalar_lea.vmem %s1538_s3, %s1318_s17 }
  0x4d   :  { %v307_v6 = vld [vmem:[%s286_s20] sm:$0x1] }
  0x4e   :  { %308 = vst [vmem:[#allocation3 + $0x5] sm:$0x1] %v307_v6 }
  0x4f   :  { %334 = vsyncadd [#allocation5 + $0x5], 16  ;;  %s1319_s21 = sld [smem:[#allocation8 + $0x6]] }
  0x55   :  { %s337_s0 = scalar_lea.vmem %s1538_s3, %s1319_s21 }
  0x56   :  { %v358_v7 = vld [vmem:[%s337_s0] sm:$0x1] }
  0x57   :  { %359 = vst [vmem:[#allocation3 + $0x6] sm:$0x1] %v358_v7 }
  0x58   :  { %385 = vsyncadd [#allocation5 + $0x6], 16  ;;  %s1320_s1 = sld [smem:[#allocation8 + $0x7]] }
  0x5e   :  { %s388_s26 = scalar_lea.vmem %s1538_s3, %s1320_s1 }
  0x5f   :  { %v409_v8 = vld [vmem:[%s388_s26] sm:$0x1] }
  0x60   :  { %410 = vst [vmem:[#allocation3 + $0x7] sm:$0x1] %v409_v8 }
  0x61   :  { %436 = vsyncadd [#allocation5 + $0x7], 16 }
  0x62   :  { %1410 = dma.done.wait [#allocation5], 16 }
  0x63   :  { %1411 = vsyncadd [#allocation5], 4294967280 }
  0x64   :  { %1412 = dma.done.wait [#allocation5 + $0x1], 16 }
  0x65   :  { %1413 = vsyncadd [#allocation5 + $0x1], 4294967280 }
  0x66   :  { %1414 = dma.done.wait [#allocation5 + $0x2], 16 }
  0x67   :  { %1415 = vsyncadd [#allocation5 + $0x2], 4294967280 }
  0x68   :  { %1416 = dma.done.wait [#allocation5 + $0x3], 16 }
  0x69   :  { %1417 = vsyncadd [#allocation5 + $0x3], 4294967280 }
  0x6a   :  { %1418 = dma.done.wait [#allocation5 + $0x4], 16 }
  0x6b   :  { %1419 = vsyncadd [#allocation5 + $0x4], 4294967280 }
  0x6c   :  { %1420 = dma.done.wait [#allocation5 + $0x5], 16 }
  0x6d   :  { %1421 = vsyncadd [#allocation5 + $0x5], 4294967280 }
  0x6e   :  { %1422 = dma.done.wait [#allocation5 + $0x6], 16 }
  0x6f   :  { %1423 = vsyncadd [#allocation5 + $0x6], 4294967280 }
  0x70   :  { %1424 = dma.done.wait [#allocation5 + $0x7], 16 }
  0x71   :  { %1425 = vsyncadd [#allocation5 + $0x7], 4294967280  ;;  %s455_s3 = sld [smem:[#allocation7]] }
  0x77   :  { %s456_s29 = scalar_lea.vmem %s1537_s2, %s455_s3 }
  0x78   :  { %v475_v9 = vld [vmem:[%s456_s29] sm:$0x1] }
  0x79   :  { %476 = vst [vmem:[#allocation2] sm:$0x1] %v475_v9 }
  0x7a   :  { %502 = vsyncadd [#allocation4], 16  ;;  %s1321_s30 = sld [smem:[#allocation7 + $0x1]] }
  0x80   :  { %s505_s7 = scalar_lea.vmem %s1537_s2, %s1321_s30 }
  0x81   :  { %v526_v10 = vld [vmem:[%s505_s7] sm:$0x1] }
  0x82   :  { %527 = vst [vmem:[#allocation2 + $0x1] sm:$0x1] %v526_v10 }
  0x83   :  { %553 = vsyncadd [#allocation4 + $0x1], 16  ;;  %s1322_s8 = sld [smem:[#allocation7 + $0x2]] }
  0x89   :  { %s556_s11 = scalar_lea.vmem %s1537_s2, %s1322_s8 }
  0x8a   :  { %v577_v11 = vld [vmem:[%s556_s11] sm:$0x1] }
  0x8b   :  { %578 = vst [vmem:[#allocation2 + $0x2] sm:$0x1] %v577_v11 }
  0x8c   :  { %604 = vsyncadd [#allocation4 + $0x2], 16  ;;  %s1323_s12 = sld [smem:[#allocation7 + $0x3]] }
  0x92   :  { %s607_s15 = scalar_lea.vmem %s1537_s2, %s1323_s12 }
  0x93   :  { %v628_v12 = vld [vmem:[%s607_s15] sm:$0x1] }
  0x94   :  { %629 = vst [vmem:[#allocation2 + $0x3] sm:$0x1] %v628_v12 }
  0x95   :  { %655 = vsyncadd [#allocation4 + $0x3], 16  ;;  %s1324_s16 = sld [smem:[#allocation7 + $0x4]] }
  0x9b   :  { %s658_s19 = scalar_lea.vmem %s1537_s2, %s1324_s16 }
  0x9c   :  { %v679_v13 = vld [vmem:[%s658_s19] sm:$0x1] }
  0x9d   :  { %680 = vst [vmem:[#allocation2 + $0x4] sm:$0x1] %v679_v13 }
  0x9e   :  { %706 = vsyncadd [#allocation4 + $0x4], 16  ;;  %s1325_s20 = sld [smem:[#allocation7 + $0x5]] }
  0xa4   :  { %s709_s23 = scalar_lea.vmem %s1537_s2, %s1325_s20 }
  0xa5   :  { %v730_v14 = vld [vmem:[%s709_s23] sm:$0x1] }
  0xa6   :  { %731 = vst [vmem:[#allocation2 + $0x5] sm:$0x1] %v730_v14 }
  0xa7   :  { %757 = vsyncadd [#allocation4 + $0x5], 16  ;;  %s1326_s0 = sld [smem:[#allocation7 + $0x6]] }
  0xad   :  { %s760_s25 = scalar_lea.vmem %s1537_s2, %s1326_s0 }
  0xae   :  { %v781_v15 = vld [vmem:[%s760_s25] sm:$0x1] }
  0xaf   :  { %782 = vst [vmem:[#allocation2 + $0x6] sm:$0x1] %v781_v15 }
  0xb0   :  { %808 = vsyncadd [#allocation4 + $0x6], 16  ;;  %s1327_s26 = sld [smem:[#allocation7 + $0x7]] }
  0xb6   :  { %s811_s28 = scalar_lea.vmem %s1537_s2, %s1327_s26 }
  0xb7   :  { %v832_v16 = vld [vmem:[%s811_s28] sm:$0x1] }
  0xb8   :  { %833 = vst [vmem:[#allocation2 + $0x7] sm:$0x1] %v832_v16 }
  0xb9   :  { %859 = vsyncadd [#allocation4 + $0x7], 16 }
  0xba   :  { %1426 = dma.done.wait [#allocation4], 16 }
  0xbb   :  { %1427 = vsyncadd [#allocation4], 4294967280 }
  0xbc   :  { %1428 = dma.done.wait [#allocation4 + $0x1], 16 }
  0xbd   :  { %1429 = vsyncadd [#allocation4 + $0x1], 4294967280 }
  0xbe   :  { %1430 = dma.done.wait [#allocation4 + $0x2], 16 }
  0xbf   :  { %1431 = vsyncadd [#allocation4 + $0x2], 4294967280 }
  0xc0   :  { %1432 = dma.done.wait [#allocation4 + $0x3], 16 }
  0xc1   :  { %1433 = vsyncadd [#allocation4 + $0x3], 4294967280 }
  0xc2   :  { %1434 = dma.done.wait [#allocation4 + $0x4], 16 }
  0xc3   :  { %1435 = vsyncadd [#allocation4 + $0x4], 4294967280 }
  0xc4   :  { %1436 = dma.done.wait [#allocation4 + $0x5], 16 }
  0xc5   :  { %1437 = vsyncadd [#allocation4 + $0x5], 4294967280 }
  0xc6   :  { %1438 = dma.done.wait [#allocation4 + $0x6], 16 }
  0xc7   :  { %1439 = vsyncadd [#allocation4 + $0x6], 4294967280 }
  0xc8   :  { %1440 = dma.done.wait [#allocation4 + $0x7], 16 }
  0xc9   :  { %1441 = vsyncadd [#allocation4 + $0x7], 4294967280  ;;  %1348 = vmatprep.subr.mxu0 %v1446_v0  ;;  %vm1447_vm1 = vmmov 0   ;;  %vm879_vm2 = vcmask 261120   ;;  %v878_v17 = vld [vmem:[#allocation2] sm:$0xff]  ;;  %v877_v18 = vld [vmem:[#allocation3] sm:$0xff]  ;;  %v976_v27 = vlaneseq }
  0xca   :  { %1350 = vmatprep.mubr.msk.f32.mxu0 %vm1447_vm1, %v1446_v0  ;;  %1349 = vmatpush3.xpose.msk.msra.mxu0 %vm879_vm2, %v878_v17  ;;  %vm985_vm5 = vcmask 64512   ;;  %v984_v46 = vld [vmem:[#allocation9] sm:$0x1]  ;;  %s1448_s2 = smov [#allocation9]  }
  0xcb   :  { %v977_v30 = vand.u32 127, %v976_v27  ;;  %s1006_s29 = sshll.u32 %s1448_s2, 4  ;;  %s1007_s29 = int_to_ptr.vmem [resolvable:$true] %s1006_s29 }
  0xcc   :  { %s1388_s5 = scalar_lea.vmem %s1007_s29, 16  ;;  %s1392_s6 = scalar_lea.vmem %s1007_s29, 32 }
  0xcd   :  { %1351 = vmatmul.mubr.msk.f32.vlgmr.msra.gmra.mxu0 %vm879_vm2, %v877_v18  ;;  %vm981_vm4 = vcmp.lt.s32.totalorder %v977_v30, 8  ;;  %p1389_p10 = scmp.ne.s32.totalorder %s1007_s29, %s1388_s5  ;;  %p1393_p11 = scmp.lt.s32.totalorder %s1007_s29, %s1007_s29 }
  0xce   :  { %p1394_p12 = scmp.lt.s32.totalorder %s1392_s6, %s1388_s5 }
  0xd0   :  { %p1395_p13 = por %p1394_p12, %p1393_p11 }
  0xd2   :  { %p1396_p0 = pnand %p1395_p13, %p1389_p10 }
 0x18d   :  { %v952_v19 = vpop.f32.mrf.mxu0 }
 0x18e   :  { %v957_v20 = vand.u32 2147483647, %v952_v19  ;;  %v956_v34 = vmin.f32 %v952_v19, 0.0 }
 0x18f   :  { %v1352_v21 = vpop.f32.mrf.mxu0 }
 0x190   :  { %v958_v22 = vsub.f32 0.0, %v957_v20 }
 0x192   :  { %v959_v23 = vmul.f32 1.442695, %v958_v22 }
 0x194   :  { %1360 = vpow2.f32 %v959_v23 }
 0x1a1   :  { %v1361_v24 = vpop.eup %1360 }
 0x1a2   :  { %v961_v25 = vadd.f32 1.0, %v1361_v24  ;;  %v964_v26 = vmul.f32 -0.5, %v1361_v24  ;;  %v967_v29 = vand.u32 2147483647, %v1361_v24 }
 0x1a4   :  { %1362 = vlog2.f32 %v961_v25  ;;  %v965_v28 = vadd.f32 1.0, %v964_v26  ;;  %vm968_vm3 = vcmp.lt.f32.partialorder %v967_v29, 0.0004427343 }
 0x1a6   :  { %v966_v33 = vmul.f32 %v1361_v24, %v965_v28 }
 0x1b1   :  { %v1363_v31 = vpop.eup %1362 }
 0x1b2   :  { %v963_v32 = vmul.f32 0.6931472, %v1363_v31 }
 0x1b4   :  { %v969_v35 = vsel %vm968_vm3, %v966_v33, %v963_v32 }
 0x1b5   :  { %v970_v36 = vsub.f32 %v956_v34, %v969_v35 }
 0x1b7   :  { %v983_v37 = vsel %vm981_vm4, %v970_v36, 0.0 }
 0x1b8   :  { %v986_v38 = vsel %vm985_vm5, %v983_v37, 0.0 }
 0x1b9   :  { %987 = vadd.xlane.f32.xlu0 %v986_v38 }
 0x242   :  { %v988_v39 = vpop.xlane.xlu0 %987 }
 0x243   :  { %v989_v40 = vrot.slane %v988_v39, 4 }
 0x245   :  { %v990_v41 = vadd.f32 %v989_v40, %v988_v39 }
 0x247   :  { %v991_v42 = vrot.slane %v990_v41, 2 }
 0x249   :  { %v992_v43 = vadd.f32 %v991_v42, %v990_v41 }
 0x24b   :  { %v993_v44 = vrot.slane %v992_v43, 1 }
 0x24d   :  { %v994_v45 = vadd.f32 %v993_v44, %v992_v43 }
 0x24f   :  { %1353 = vpush %v994_v45 }
 0x280   :  { %s1354_s30 = spop %1353 }
 0x281   :  { %v996_v47 = vstv %s1354_s30 }
 0x282   :  { %v997_v48 = vsub.f32 %v984_v46, %v996_v47 }
 0x284   :  { %999 = vst.msk [vmem:[#allocation9] sm:$0x1] %vm26_vm0, %v997_v48 }
 0x285   :  { %1399 = shalt.err (!%p1396_p0)
}
 0x286   :  { %1009 = dma.vmem_to_hbm [thread:$0]  %s1007_s29, 16, %s1539_s4, [#allocation10]  }
 0x287   :  { %1442 = dma.done.wait [#allocation10], 16  }
 0x288   :  { %1443 = vsyncadd [#allocation10], 4294967280 }
 0x289   :  { %1013 = vsyncpa [#allocation10], 1 }
 0x28a   :  { %1014 = vsyncmov [#allocation4] }
 0x28d   :  { %s1015_s9 = vpop.sfrf %1014 }
 0x28e   :  { %p1330_p1 = scmp.ne.s32.totalorder %s1015_s9, 0 }
 0x290   :  { %1019 = shalt.err (%p1330_p1)  }
 0x291   :  { %1021 = vsyncmov [#allocation4 + $0x1] }
 0x294   :  { %s1022_s10 = vpop.sfrf %1021 }
 0x295   :  { %p1331_p2 = scmp.ne.s32.totalorder %s1022_s10, 0 }
 0x297   :  { %1026 = shalt.err (%p1331_p2)  }
 0x298   :  { %1028 = vsyncmov [#allocation4 + $0x2] }
 0x29b   :  { %s1029_s11 = vpop.sfrf %1028 }
 0x29c   :  { %p1332_p3 = scmp.ne.s32.totalorder %s1029_s11, 0 }
 0x29e   :  { %1033 = shalt.err (%p1332_p3)  }
 0x29f   :  { %1035 = vsyncmov [#allocation4 + $0x3] }
 0x2a2   :  { %s1036_s12 = vpop.sfrf %1035 }
 0x2a3   :  { %p1333_p4 = scmp.ne.s32.totalorder %s1036_s12, 0 }
 0x2a5   :  { %1040 = shalt.err (%p1333_p4)  }
 0x2a6   :  { %1042 = vsyncmov [#allocation4 + $0x4] }
 0x2a9   :  { %s1043_s4 = vpop.sfrf %1042 }
 0x2aa   :  { %p1334_p5 = scmp.ne.s32.totalorder %s1043_s4, 0 }
 0x2ac   :  { %1047 = shalt.err (%p1334_p5)  }
 0x2ad   :  { %1049 = vsyncmov [#allocation4 + $0x5] }
 0x2b0   :  { %s1050_s13 = vpop.sfrf %1049 }
 0x2b1   :  { %p1335_p6 = scmp.ne.s32.totalorder %s1050_s13, 0 }
 0x2b3   :  { %1054 = shalt.err (%p1335_p6)  }
 0x2b4   :  { %1056 = vsyncmov [#allocation4 + $0x6] }
 0x2b7   :  { %s1057_s14 = vpop.sfrf %1056 }
 0x2b8   :  { %p1336_p7 = scmp.ne.s32.totalorder %s1057_s14, 0 }
 0x2ba   :  { %1061 = shalt.err (%p1336_p7)  }
 0x2bb   :  { %1063 = vsyncmov [#allocation4 + $0x7] }
 0x2be   :  { %s1064_s15 = vpop.sfrf %1063 }
 0x2bf   :  { %p1337_p8 = scmp.ne.s32.totalorder %s1064_s15, 0 }
 0x2c1   :  { %1068 = shalt.err (%p1337_p8)  }
 0x2c2   :  { %1069 = vsyncmov [#allocation5] }
 0x2c5   :  { %s1070_s16 = vpop.sfrf %1069 }
 0x2c6   :  { %p1338_p9 = scmp.ne.s32.totalorder %s1070_s16, 0 }
 0x2c8   :  { %1074 = shalt.err (%p1338_p9)  }
 0x2c9   :  { %1076 = vsyncmov [#allocation5 + $0x1] }
 0x2cc   :  { %s1077_s17 = vpop.sfrf %1076 }
 0x2cd   :  { %p1339_p10 = scmp.ne.s32.totalorder %s1077_s17, 0 }
 0x2cf   :  { %1081 = shalt.err (%p1339_p10)  }
 0x2d0   :  { %1083 = vsyncmov [#allocation5 + $0x2] }
 0x2d3   :  { %s1084_s18 = vpop.sfrf %1083 }
 0x2d4   :  { %p1340_p11 = scmp.ne.s32.totalorder %s1084_s18, 0 }
 0x2d6   :  { %1088 = shalt.err (%p1340_p11)  }
 0x2d7   :  { %1090 = vsyncmov [#allocation5 + $0x3] }
 0x2da   :  { %s1091_s19 = vpop.sfrf %1090 }
 0x2db   :  { %p1341_p12 = scmp.ne.s32.totalorder %s1091_s19, 0 }
 0x2dd   :  { %1095 = shalt.err (%p1341_p12)  }
 0x2de   :  { %1097 = vsyncmov [#allocation5 + $0x4] }
 0x2e1   :  { %s1098_s20 = vpop.sfrf %1097 }
 0x2e2   :  { %p1342_p13 = scmp.ne.s32.totalorder %s1098_s20, 0 }
 0x2e4   :  { %1102 = shalt.err (%p1342_p13)  }
 0x2e5   :  { %1104 = vsyncmov [#allocation5 + $0x5] }
 0x2e8   :  { %s1105_s21 = vpop.sfrf %1104 }
 0x2e9   :  { %p1343_p0 = scmp.ne.s32.totalorder %s1105_s21, 0 }
 0x2eb   :  { %1109 = shalt.err (%p1343_p0)  }
 0x2ec   :  { %1111 = vsyncmov [#allocation5 + $0x6] }
 0x2ef   :  { %s1112_s22 = vpop.sfrf %1111 }
 0x2f0   :  { %p1344_p1 = scmp.ne.s32.totalorder %s1112_s22, 0 }
 0x2f2   :  { %1116 = shalt.err (%p1344_p1)  }
 0x2f3   :  { %1118 = vsyncmov [#allocation5 + $0x7] }
 0x2f6   :  { %s1119_s23 = vpop.sfrf %1118 }
 0x2f7   :  { %p1345_p2 = scmp.ne.s32.totalorder %s1119_s23, 0 }
 0x2f9   :  { %1123 = shalt.err (%p1345_p2)  }

</bundles_post_ra>
